<compile_context>
chip_gen: v7x
topology: tpu7x:2x2x1
jax: 0.10.0
libtpu: 0.0.40
codegen_flags: <defaults>
</compile_context>

<pallas_src>
import functools

import jax
import jax.numpy as jnp
from jax import lax
from jax.experimental import pallas as pl
from jax.experimental.pallas import tpu as pltpu


_TARGET_BLOCK_BYTES = 8 * 1024 * 1024   # per-step input block (double-buffered)
_VMEM_LIMIT_BYTES = 40 * 1024 * 1024    # < 64 MiB (v7x physical), << 128 MiB (v5e/v6e)


def _pick_pack_factor(h, w):
    """Smallest divisor g of h with g*w >= 128 (lane-dense packed rows)."""
    for g in range(1, h + 1):
        if h % g == 0 and g * w >= 128:
            return g
    return h  # whole plane fits in one packed row (h*w < 128)


def _tv_kernel(x_ref, h_ref, w_ref, d1_acc, d2_acc, dw_acc, *, W, G, Hg, L):
    # x_ref: (PP, Hg, L) block = PP whole planes, lane-packed.
    j = pl.program_id(1)

    @pl.when(j == 0)
    def _init():
        d1_acc[...] = jnp.zeros_like(d1_acc)
        d2_acc[...] = jnp.zeros_like(d2_acc)
        dw_acc[...] = jnp.zeros_like(dw_acc)

    x = x_ref[...].astype(jnp.float32)                 # (PP, Hg, L)

    # --- horizontal (W-direction) squared diffs ----------------------------
    if L > 1:
        dw = x[:, :, 1:] - x[:, :, :-1]                # (PP, Hg, L-1)
        dwsq = dw * dw
        if G > 1:
            # Mask seam columns where the diff crosses two packed H-rows.
            col = lax.broadcasted_iota(jnp.int32, (1, 1, L - 1), 2)
            dwsq = jnp.where((col % W) != (W - 1), dwsq, 0.0)
        # Reduce only over the leading plane axis: pure VPU adds, no XLU.
        dw_acc[...] += jnp.sum(dwsq, axis=0)

    # --- vertical (H-direction) squared diffs ------------------------------
    if G > 1:
        # Adjacent H-rows packed into the same lane row: shift by W lanes.
        # TODO(synk): pltpu.roll(x, -W, axis=-1) + mask is an XLU-slot
        # alternative if a bundle dump shows these slices materializing copies.
        d1 = x[:, :, W:] - x[:, :, :-W]                # (PP, Hg, (G-1)*W)
        d1_acc[...] += jnp.sum(d1 * d1, axis=0)
    if Hg > 1:
        # Across adjacent packed rows of the same plane.
        d2 = x[:, 1:, :W] - x[:, :-1, L - W:]          # (PP, Hg-1, W)
        d2_acc[...] += jnp.sum(d2 * d2, axis=0)

    # --- single cross-lane reduce per core, written once --------------------
    @pl.when(j == pl.num_programs(1) - 1)
    def _finalize():
        h_tot = jnp.sum(d1_acc[...]) + jnp.sum(d2_acc[...])
        w_tot = jnp.sum(dw_acc[...])
        h_ref[...] = jnp.broadcast_to(h_tot.reshape(1, 1), h_ref.shape)
        w_ref[...] = jnp.broadcast_to(w_tot.reshape(1, 1), w_ref.shape)


def tv_loss(x, tv_loss_weight=1.0):
    """Matches TVLoss.forward for NCHW input x."""
    b, c, h, w = x.shape
    n = b * c

    g = _pick_pack_factor(h, w)    # rows folded per packed row
    hg = h // g                    # packed rows per plane
    l = g * w                      # packed row length (lane axis)

    # Pure row-major reshape: no data movement.
    xp = x.reshape(n, hg, l)

    itemsize = jnp.dtype(x.dtype).itemsize
    plane_bytes = hg * l * itemsize
    nc = 2 if n >= 2 else 1        # leading "parallel" axis -> 2 TCs on v7x
    # Planes per block: as many as fit the ~8 MiB per-step budget.
    # TODO(synk): a single plane larger than the budget is not sub-tiled here.
    pp = max(1, min(-(-n // nc), _TARGET_BLOCK_BYTES // max(plane_bytes, 1)))
    k = -(-n // (nc * pp))         # reduction steps per core
    npad = nc * pp * k
    if npad != n:
        # Zero planes contribute 0 to both sums.
        xp = jnp.pad(xp, ((0, npad - n), (0, 0), (0, 0)))

    kernel = functools.partial(_tv_kernel, W=w, G=g, Hg=hg, L=l)

    cost = pl.CostEstimate(
        flops=6 * x.size,                # 2 sub + 2 mul + 2 accumulate per elem
        transcendentals=0,
        bytes_accessed=x.size * itemsize + 2 * nc * 8 * 128 * 4,
    )

    h_out, w_out = pl.pallas_call(
        kernel,
        out_shape=(
            jax.ShapeDtypeStruct((nc * 8, 128), jnp.float32),
            jax.ShapeDtypeStruct((nc * 8, 128), jnp.float32),
        ),
        grid_spec=pltpu.PrefetchScalarGridSpec(
            num_scalar_prefetch=0,
            grid=(nc, k),
            in_specs=[
                pl.BlockSpec((pp, hg, l), lambda i, j: (i * k + j, 0, 0)),
            ],
            out_specs=[
                pl.BlockSpec((8, 128), lambda i, j: (i, 0)),
                pl.BlockSpec((8, 128), lambda i, j: (i, 0)),
            ],
            scratch_shapes=[
                pltpu.VMEM((hg, max((g - 1) * w, 1)), jnp.float32),  # d1 acc
                pltpu.VMEM((max(hg - 1, 1), w), jnp.float32),        # d2 acc
                pltpu.VMEM((hg, max(l - 1, 1)), jnp.float32),        # dw acc
            ],
        ),
        compiler_params=pltpu.CompilerParams(
            dimension_semantics=("parallel", "arbitrary"),
            vmem_limit_bytes=_VMEM_LIMIT_BYTES,
        ),
        cost_estimate=cost,
    )(xp)

    # Each core's (8,128) tile is a broadcast of its partial; pick one lane.
    h_sum = jnp.sum(h_out[::8, 0])
    w_sum = jnp.sum(w_out[::8, 0])

    # Same normalization as the PyTorch module (H==1 / W==1 gives inf/nan,
    # exactly like torch's 0-count division would).
    count_h = jnp.float32(c * (h - 1) * w)
    count_w = jnp.float32(c * h * (w - 1))
    return tv_loss_weight * 2.0 * (h_sum / count_h + w_sum / count_w) / b


if __name__ == "__main__":
    key = jax.random.PRNGKey(0)
    x = jax.random.normal(key, (2, 4, 16, 16), dtype=jnp.float32)

    out = jax.block_until_ready(tv_loss(x, tv_loss_weight=1.0))

    # Pure-JAX reference check.
    b, c, h, w = x.shape
    dh = x[:, :, 1:, :] - x[:, :, :-1, :]
    dw = x[:, :, :, 1:] - x[:, :, :, :-1]
    ref = 2.0 * (jnp.sum(dh ** 2) / (c * (h - 1) * w)
                 + jnp.sum(dw ** 2) / (c * h * (w - 1))) / b
    assert jnp.allclose(out, ref, rtol=1e-5, atol=1e-5), (out, ref)

    print("KERNEL_OK")
</pallas_src>

<mosaic_0001>
module attributes {stable_mosaic.version = 11 : i64} {
  func.func @_tv_kernel(%arg0: i32, %arg1: i32, %arg2: memref<4x2x128xf32, #tpu.memory_space<vmem>>, %arg3: memref<8x128xf32, #tpu.memory_space<vmem>>, %arg4: memref<8x128xf32, #tpu.memory_space<vmem>>, %arg5: memref<2x112xf32, #tpu.memory_space<vmem>>, %arg6: memref<1x16xf32, #tpu.memory_space<vmem>>, %arg7: memref<2x127xf32, #tpu.memory_space<vmem>>) attributes {dimension_semantics = [#tpu.dimension_semantics<parallel>, #tpu.dimension_semantics<arbitrary>], iteration_bounds = array<i64: 2, 1>, scalar_prefetch = 0 : i64, scratch_operands = 3 : i64, tpu.core_type = #tpu.core_type<tc>, window_params = [{transform_indices = @transform_0, window_bounds = array<i64: 4, 2, 128>}, {transform_indices = @transform_1, window_bounds = array<i64: 8, 128>}, {transform_indices = @transform_2, window_bounds = array<i64: 8, 128>}]} {
    %c0_i32 = arith.constant 0 : i32
    %0 = arith.cmpi eq, %arg1, %c0_i32 : i32
    %1 = arith.extui %0 : i1 to i32
    %c0_i32_0 = arith.constant 0 : i32
    %2 = arith.cmpi ne, %1, %c0_i32_0 : i32
    scf.if %2 {
      %cst_24 = arith.constant 0.000000e+00 : f32
      %54 = vector.broadcast %cst_24 : f32 to vector<2x112xf32>
      %c0_25 = arith.constant 0 : index
      %c0_26 = arith.constant 0 : index
      %55 = vector.load %arg5[%c0_25, %c0_26] : memref<2x112xf32, #tpu.memory_space<vmem>>, vector<2x112xf32>
      tpu.vector_store %arg5[%c0_25, %c0_26], %54 {strides = array<i32>} : memref<2x112xf32, #tpu.memory_space<vmem>>, vector<2x112xf32>,
      %cst_27 = arith.constant 0.000000e+00 : f32
      %56 = vector.broadcast %cst_27 : f32 to vector<1x16xf32>
      %c0_28 = arith.constant 0 : index
      %c0_29 = arith.constant 0 : index
      %57 = vector.load %arg6[%c0_28, %c0_29] : memref<1x16xf32, #tpu.memory_space<vmem>>, vector<1x16xf32>
      tpu.vector_store %arg6[%c0_28, %c0_29], %56 {strides = array<i32>} : memref<1x16xf32, #tpu.memory_space<vmem>>, vector<1x16xf32>,
      %cst_30 = arith.constant 0.000000e+00 : f32
      %58 = vector.broadcast %cst_30 : f32 to vector<2x127xf32>
      %c0_31 = arith.constant 0 : index
      %c0_32 = arith.constant 0 : index
      %59 = vector.load %arg7[%c0_31, %c0_32] : memref<2x127xf32, #tpu.memory_space<vmem>>, vector<2x127xf32>
      tpu.vector_store %arg7[%c0_31, %c0_32], %58 {strides = array<i32>} : memref<2x127xf32, #tpu.memory_space<vmem>>, vector<2x127xf32>,
    } else {
    }
    %c0 = arith.constant 0 : index
    %c0_1 = arith.constant 0 : index
    %c0_2 = arith.constant 0 : index
    %3 = vector.load %arg2[%c0, %c0_1, %c0_2] : memref<4x2x128xf32, #tpu.memory_space<vmem>>, vector<4x2x128xf32>
    %4 = vector.extract_strided_slice %3 {offsets = [0, 0, 1], sizes = [4, 2, 127], strides = [1, 1, 1]} : vector<4x2x128xf32> to vector<4x2x127xf32>
    %5 = vector.extract_strided_slice %3 {offsets = [0, 0, 0], sizes = [4, 2, 127], strides = [1, 1, 1]} : vector<4x2x128xf32> to vector<4x2x127xf32>
    %6 = arith.subf %4, %5 : vector<4x2x127xf32>
    %7 = arith.mulf %6, %6 : vector<4x2x127xf32>
    %8 = tpu.iota {dimensions = array<i32: 2>} : vector<1x1x127xi32>
    %c16_i32 = arith.constant 16 : i32
    %c0_i32_3 = arith.constant 0 : i32
    %9 = arith.cmpi eq, %c16_i32, %c0_i32_3 : i32
    %c1_i32 = arith.constant 1 : i32
    %10 = arith.select %9, %c1_i32, %c16_i32 : i32
    %11 = vector.broadcast %10 : i32 to vector<1x1x127xi32>
    %12 = arith.remsi %8, %11 : vector<1x1x127xi32>
    %c0_i32_4 = arith.constant 0 : i32
    %13 = vector.broadcast %c0_i32_4 : i32 to vector<1x1x127xi32>
    %14 = arith.cmpi ne, %12, %13 : vector<1x1x127xi32>
    %c0_i32_5 = arith.constant 0 : i32
    %15 = vector.broadcast %c0_i32_5 : i32 to vector<1x1x127xi32>
    %16 = arith.cmpi slt, %12, %15 : vector<1x1x127xi32>
    %c0_i32_6 = arith.constant 0 : i32
    %17 = arith.cmpi slt, %10, %c0_i32_6 : i32
    %18 = vector.broadcast %17 : i1 to vector<1x1x127xi1>
    %19 = vector.broadcast %18 : vector<1x1x127xi1> to vector<1x1x127xi1>
    %20 = arith.xori %16, %19 : vector<1x1x127xi1>
    %21 = arith.andi %20, %14 : vector<1x1x127xi1>
    %22 = vector.broadcast %10 : i32 to vector<1x1x127xi32>
    %23 = arith.addi %12, %22 : vector<1x1x127xi32>
    %24 = arith.select %21, %23, %12 : vector<1x1x127xi1>, vector<1x1x127xi32>
    %c15_i32 = arith.constant 15 : i32
    %25 = vector.broadcast %c15_i32 : i32 to vector<1x1x127xi32>
    %26 = arith.cmpi ne, %24, %25 : vector<1x1x127xi32>
    %cst = arith.constant 0.000000e+00 : f32
    %27 = vector.shape_cast %26 : vector<1x1x127xi1> to vector<1x1x127xi1>
    %28 = vector.broadcast %27 : vector<1x1x127xi1> to vector<4x2x127xi1>
    %29 = vector.broadcast %cst : f32 to vector<4x2x127xf32>
    %30 = arith.select %28, %7, %29 : vector<4x2x127xi1>, vector<4x2x127xf32>
    %c0_7 = arith.constant 0 : index
    %c0_8 = arith.constant 0 : index
    %31 = vector.load %arg7[%c0_7, %c0_8] : memref<2x127xf32, #tpu.memory_space<vmem>>, vector<2x127xf32>
    %cst_9 = arith.constant dense<0.000000e+00> : vector<2x127xf32>
    %32 = vector.multi_reduction <add>, %30, %cst_9 [0] : vector<4x2x127xf32> to vector<2x127xf32>
    %33 = arith.addf %31, %32 : vector<2x127xf32>
    %c0_10 = arith.constant 0 : index
    %c0_11 = arith.constant 0 : index
    %34 = vector.load %arg7[%c0_10, %c0_11] : memref<2x127xf32, #tpu.memory_space<vmem>>, vector<2x127xf32>
    tpu.vector_store %arg7[%c0_10, %c0_11], %33 {strides = array<i32>} : memref<2x127xf32, #tpu.memory_space<vmem>>, vector<2x127xf32>,
    %35 = vector.extract_strided_slice %3 {offsets = [0, 0, 16], sizes = [4, 2, 112], strides = [1, 1, 1]} : vector<4x2x128xf32> to vector<4x2x112xf32>
    %36 = vector.extract_strided_slice %3 {offsets = [0, 0, 0], sizes = [4, 2, 112], strides = [1, 1, 1]} : vector<4x2x128xf32> to vector<4x2x112xf32>
    %37 = arith.subf %35, %36 : vector<4x2x112xf32>
    %c0_12 = arith.constant 0 : index
    %c0_13 = arith.constant 0 : index
    %38 = vector.load %arg5[%c0_12, %c0_13] : memref<2x112xf32, #tpu.memory_space<vmem>>, vector<2x112xf32>
    %39 = arith.mulf %37, %37 : vector<4x2x112xf32>
    %cst_14 = arith.constant dense<0.000000e+00> : vector<2x112xf32>
    %40 = vector.multi_reduction <add>, %39, %cst_14 [0] : vector<4x2x112xf32> to vector<2x112xf32>
    %41 = arith.addf %38, %40 : vector<2x112xf32>
    %c0_15 = arith.constant 0 : index
    %c0_16 = arith.constant 0 : index
    %42 = vector.load %arg5[%c0_15, %c0_16] : memref<2x112xf32, #tpu.memory_space<vmem>>, vector<2x112xf32>
    tpu.vector_store %arg5[%c0_15, %c0_16], %41 {strides = array<i32>} : memref<2x112xf32, #tpu.memory_space<vmem>>, vector<2x112xf32>,
    %43 = vector.extract_strided_slice %3 {offsets = [0, 1, 0], sizes = [4, 1, 16], strides = [1, 1, 1]} : vector<4x2x128xf32> to vector<4x1x16xf32>
    %44 = vector.extract_strided_slice %3 {offsets = [0, 0, 112], sizes = [4, 1, 16], strides = [1, 1, 1]} : vector<4x2x128xf32> to vector<4x1x16xf32>
    %45 = arith.subf %43, %44 : vector<4x1x16xf32>
    %c0_17 = arith.constant 0 : index
    %c0_18 = arith.constant 0 : index
    %46 = vector.load %arg6[%c0_17, %c0_18] : memref<1x16xf32, #tpu.memory_space<vmem>>, vector<1x16xf32>
    %47 = arith.mulf %45, %45 : vector<4x1x16xf32>
    %cst_19 = arith.constant dense<0.000000e+00> : vector<1x16xf32>
    %48 = vector.multi_reduction <add>, %47, %cst_19 [0] : vector<4x1x16xf32> to vector<1x16xf32>
    %49 = arith.addf %46, %48 : vector<1x16xf32>
    %c0_20 = arith.constant 0 : index
    %c0_21 = arith.constant 0 : index
    %50 = vector.load %arg6[%c0_20, %c0_21] : memref<1x16xf32, #tpu.memory_space<vmem>>, vector<1x16xf32>
    tpu.vector_store %arg6[%c0_20, %c0_21], %49 {strides = array<i32>} : memref<1x16xf32, #tpu.memory_space<vmem>>, vector<1x16xf32>,
    %c0_i32_22 = arith.constant 0 : i32
    %51 = arith.cmpi eq, %arg1, %c0_i32_22 : i32
    %52 = arith.extui %51 : i1 to i32
    %c0_i32_23 = arith.constant 0 : i32
    %53 = arith.cmpi ne, %52, %c0_i32_23 : i32
    scf.if %53 {
      %c0_24 = arith.constant 0 : index
      %c0_25 = arith.constant 0 : index
      %54 = vector.load %arg5[%c0_24, %c0_25] : memref<2x112xf32, #tpu.memory_space<vmem>>, vector<2x112xf32>
      %55 = vector.shape_cast %54 : vector<2x112xf32> to vector<1x2x112xf32>
      %cst_26 = arith.constant dense<0.000000e+00> : vector<1xf32>
      %56 = vector.multi_reduction <add>, %55, %cst_26 [1, 2] : vector<1x2x112xf32> to vector<1xf32>
      %57 = vector.shape_cast %56 : vector<1xf32> to vector<1x1x1xf32>
      %58 = vector.extract %57[0, 0, 0] : f32 from vector<1x1x1xf32>
      %c0_27 = arith.constant 0 : index
      %c0_28 = arith.constant 0 : index
      %59 = vector.load %arg6[%c0_27, %c0_28] : memref<1x16xf32, #tpu.memory_space<vmem>>, vector<1x16xf32>
      %60 = vector.shape_cast %59 : vector<1x16xf32> to vector<1x1x16xf32>
      %cst_29 = arith.constant dense<0.000000e+00> : vector<1xf32>
      %61 = vector.multi_reduction <add>, %60, %cst_29 [1, 2] : vector<1x1x16xf32> to vector<1xf32>
      %62 = vector.shape_cast %61 : vector<1xf32> to vector<1x1x1xf32>
      %63 = vector.extract %62[0, 0, 0] : f32 from vector<1x1x1xf32>
      %64 = arith.addf %58, %63 : f32
      %c0_30 = arith.constant 0 : index
      %c0_31 = arith.constant 0 : index
      %65 = vector.load %arg7[%c0_30, %c0_31] : memref<2x127xf32, #tpu.memory_space<vmem>>, vector<2x127xf32>
      %66 = vector.shape_cast %65 : vector<2x127xf32> to vector<1x2x127xf32>
      %cst_32 = arith.constant dense<0.000000e+00> : vector<1xf32>
      %67 = vector.multi_reduction <add>, %66, %cst_32 [1, 2] : vector<1x2x127xf32> to vector<1xf32>
      %68 = vector.shape_cast %67 : vector<1xf32> to vector<1x1x1xf32>
      %69 = vector.extract %68[0, 0, 0] : f32 from vector<1x1x1xf32>
      %70 = vector.broadcast %64 : f32 to vector<1x1xf32>
      %71 = vector.shape_cast %70 : vector<1x1xf32> to vector<1x1xf32>
      %72 = vector.broadcast %71 : vector<1x1xf32> to vector<8x128xf32>
      %c0_33 = arith.constant 0 : index
      %c0_34 = arith.constant 0 : index
      %73 = vector.load %arg3[%c0_33, %c0_34] : memref<8x128xf32, #tpu.memory_space<vmem>>, vector<8x128xf32>
      tpu.vector_store %arg3[%c0_33, %c0_34], %72 {strides = array<i32>} : memref<8x128xf32, #tpu.memory_space<vmem>>, vector<8x128xf32>,
      %74 = vector.broadcast %69 : f32 to vector<1x1xf32>
      %75 = vector.shape_cast %74 : vector<1x1xf32> to vector<1x1xf32>
      %76 = vector.broadcast %75 : vector<1x1xf32> to vector<8x128xf32>
      %c0_35 = arith.constant 0 : index
      %c0_36 = arith.constant 0 : index
      %77 = vector.load %arg4[%c0_35, %c0_36] : memref<8x128xf32, #tpu.memory_space<vmem>>, vector<8x128xf32>
      tpu.vector_store %arg4[%c0_35, %c0_36], %76 {strides = array<i32>} : memref<8x128xf32, #tpu.memory_space<vmem>>, vector<8x128xf32>,
    } else {
    }
    return
  }
  func.func @transform_0(%arg0: i32, %arg1: i32) -> (i32, i32, i32) {
    %c1_i32 = arith.constant 1 : i32
    %0 = arith.muli %arg0, %c1_i32 : i32
    %1 = arith.addi %0, %arg1 : i32
    %c0_i32 = arith.constant 0 : i32
    %c0_i32_0 = arith.constant 0 : i32
    %c0_i32_1 = arith.constant 0 : i32
    return %1, %c0_i32, %c0_i32_0 : i32, i32, i32
  }
  func.func @transform_1(%arg0: i32, %arg1: i32) -> (i32, i32) {
    %c0_i32 = arith.constant 0 : i32
    %c0_i32_0 = arith.constant 0 : i32
    return %arg0, %c0_i32 : i32, i32
  }
  func.func @transform_2(%arg0: i32, %arg1: i32) -> (i32, i32) {
    %c0_i32 = arith.constant 0 : i32
    %c0_i32_0 = arith.constant 0 : i32
    return %arg0, %c0_i32 : i32, i32
  }
}

</mosaic_0001>

<bundles_post_ra>
// kernel: tpu_custom_call.1
= control target key start
LH: loop header
LB: loop body
LE: loop exit
PB: predicated region body
PF: predicated region fallthrough
CT: control target
= control target key end

     0   :  { %8 = vsyncpa [#allocation6], 0  ;;  %s1092_s0 = inlined_call_operand.hbm [shape: f32[8,2,128], index: 0, kind: input, shape index: {}]   ;;  %s1093_s1 = inlined_call_operand.hbm [shape: f32[16,128], index: 1, kind: output, shape index: {0}]   ;;  %s1094_s2 = inlined_call_operand.hbm [shape: f32[16,128], index: 2, kind: output, shape index: {1}]  }
   0x1   :  { %10 = vsyncpa [#allocation6 + $0x1], 0 }
   0x2   :  { %11 = vsyncpa [#allocation7], 0 }
   0x3   :  { %13 = vsyncpa [#allocation7 + $0x1], 0 }
   0x4   :  { %14 = vsyncpa [#allocation10], 0 }
   0x5   :  { %16 = vsyncpa [#allocation10 + $0x1], 0  ;;  %s820_s9 = smov 0   ;;  %s822_s10 = smov 0  }
   0x6   :  { %s824_s11 = smov 0   ;;  %s826_s12 = smov 0  }
   0x7   :  { %s828_s13 = smov 0   ;;  %s830_s14 = smov 0  }
   0x8 LB: > { %s549_s15 = sadd.s32 4294967295, %s792_s14   ;;  %s550_s16 = sadd.s32 4294967294, %s792_s14   ;;  %s792_s14 = sphi %s830_s14, %s22_s14   ;;  %s788_s13 = sphi %s828_s13, %s1111_s13   ;;  %s784_s12 = sphi %s826_s12, %s1110_s12   ;;  %s780_s11 = sphi %s824_s11, %s1109_s11   ;;  %s776_s10 = sphi %s822_s10, %s1108_s10   ;;  %s772_s9 = sphi %s820_s9, %s1107_s9  }
   0x9   : > { %s34_s17 = sadd.s32 1, %s788_s13  ;;  %s43_s18 = sadd.s32 1, %s780_s11 }
   0xa   : > { %p36_p0 = scmp.ge.s32.totalorder %s34_s17, 2  ;;  %p50_p1 = scmp.ne.s32.totalorder %s780_s11, %s776_s10 }
   0xb   : > { %p51_p2 = scmp.eq.s32.totalorder %s792_s14, 0  ;;  %p56_p3 = scmp.ne.s32.totalorder %s776_s10, %s772_s9 }
   0xc   : > { %s1113_s17 = smov (%p36_p0, %s34_s17), 0  ;;  %p57_p5 = scmp.eq.s32.totalorder %s549_s15, 0 }
   0xd   : > { %p861_p4 = por %p51_p2, %p50_p1  ;;  %s40_s20 = ssub.s32 %s788_s13, %s1113_s17 }
   0xe   : > { %p80_p6 = scmp.eq.s32.totalorder %s549_s15, 1  ;;  %p41_p7 = scmp.eq.s32.totalorder %s40_s20, 0 }
   0xf   : > { %p867_p8 = por %p57_p5, %p56_p3  ;;  %p86_p10 = scmp.eq.s32.totalorder %s550_s16, 1 }
  0x10   : > { %p871_p9 = por %p80_p6, %p50_p1  ;;  %p590_p13 = scmp.lt.s32.totalorder %s792_s14, 2 }
  0x11   : > { %s876_s23 = scalar_select %p41_p7, %s780_s11, %s43_s18  }
  0x12   : > { %s1098_s22 = scalar_select %p871_p9, 1, 0 }
  0x13   : > { %p878_p11 = por %p86_p10, %p56_p3  ;;  %s132_s25 = sand.u32 1, %s780_s11  }
  0x14   : > { %s553_s26 = sshll.u32 %s132_s25, 3  ;;  %s566_s27 = sshll.u32 %s788_s13, 7 }
  0x15   : > { %s1099_s24 = scalar_select %p878_p11, 1, 0 }
  0x16   : > { %s889_s30 = scalar_lea.hbm %s1092_s0, %s566_s27  ;;  %s136_s3 = scalar_lea.vmem [#allocation5], %s553_s26 }
  0x17   : > { %s144_s4 = sshll.u32 %s136_s3, 4  ;;  %p895_p0 = pnand %p590_p13, %p861_p4  ;;  %s891_s4 = int_to_ptr.vmem [resolvable:$true] %s144_s4 }
  0x18   : > { %s900_s6 = scalar_lea.sflag [#allocation6], %s132_s25  ;;  %s648_s7 = scalar_lea.hbm %s889_s30, 128 }
  0x19   : > { %p649_p2 = scmp.ne.s32.totalorder %s889_s30, %s648_s7  ;;  %p650_p3 = pneg %p895_p0 }
  0x1a   : > { %s653_s16 = scalar_lea.hbm %s1092_s0, 256  ;;  %p654_p4 = scmp.lt.u32.totalorder %s889_s30, %s1092_s0 }
  0x1b   : > { %p651_p5 = pnand %p650_p3, %p649_p2  ;;  %p655_p7 = scmp.lt.u32.totalorder %s653_s16, %s648_s7 }
  0x1c   : > { %p657_p13 = scmp.lt.u32.totalorder %s648_s7, %s889_s30 }
  0x1d   : > { %p652_p6 = pneg %p651_p5  ;;  %p656_p10 = por %p655_p7, %p654_p4 }
  0x1f   : > { %p658_p12 = por %p657_p13, %p656_p10 }
  0x21   : > { %p659_p1 = pnand %p658_p12, %p652_p6 }
  0x23   : > { %662 = shalt.err (!%p659_p1)
}
  0x24   : > { %s663_s20 = scalar_lea.vmem %s891_s4, 128  ;;  %s794_s25 = smov [#allocation5]  }
  0x25   : > { %p664_p2 = scmp.ne.s32.totalorder %s891_s4, %s663_s20  ;;  %s668_s26 = sshll.u32 %s794_s25, 4  ;;  %s669_s26 = int_to_ptr.vmem [resolvable:$false] %s668_s26 }
  0x26   : > { %s670_s27 = scalar_lea.vmem %s669_s26, 256  ;;  %p671_p9 = scmp.lt.s32.totalorder %s891_s4, %s669_s26 }
  0x27   : > { %p666_p5 = pnand %p664_p2, %p650_p3  ;;  %p672_p4 = scmp.lt.s32.totalorder %s670_s27, %s663_s20 }
  0x29   : > { %p667_p11 = pneg %p666_p5  ;;  %p673_p7 = por %p672_p4, %p671_p9 }
  0x2b   : > { %p674_p10 = pnand %p673_p7, %p667_p11 }
  0x2d   : > { %677 = shalt.err (!%p674_p10)
}
  0x2e   : > { %s795_s28 = smov 32   ;;  %s796_s29 = smov 2  }
  0x2f   : > { %582 = dma.hbm_to_vmem [thread:$0]  (!%p895_p0), %s889_s30, 128, %s891_s4, %s900_s6, %s795_s28, %s795_s28, %s796_s29  }
  0x30   : > { %p152_p12 = scmp.lt.s32.totalorder %s792_s14, 3  ;;  %p1101_p1 = scmp.ge.s32.totalorder %s792_s14, 1 }
  0x32   : > { %p153_p3 = pnand %p1101_p1, %p152_p12 }
  0x33   : > { %s932_s3 = sand.u32 (!%p153_p3), 1, %s776_s10  }
  0x34   : > { %156 = sbr.rel (%p153_p3) target bundleno = 571 (0x23b), region = 24  ;;  %s935_s7 = sshll.u32 (!%p153_p3), %s932_s3, 3 }
  0x35   : > { %s159_s8 = scalar_lea.sflag (!%p153_p3), [#allocation6], %s932_s3  ;;  %s162_s15 = scalar_lea.vmem (!%p153_p3), [#allocation5], %s935_s7 }
  0x3b   : > { %759 = dma.done.wait (%p867_p8), %s159_s8, 128  }
  0x3c   : > { %761 = vsyncadd (%p867_p8), %s159_s8, 4294967168  ;;  %v943_v0 = vld [vmem:[%s162_s15] sm:$0x3]  ;;  %s797_s30 = smov 1   ;;  %s798_s4 = smov 16   ;;  %vm198_vm0 = vcmask 1033216   ;;  %v228_v44 = vlaneseq }
  0x3d   : > { %208 = vrot.lane.b32.xlu1 %v943_v0, %s797_s30  ;;  %276 = vrot.lane.b32.xlu0 %v943_v0, %s798_s4  ;;  %v947_v1 = vld [vmem:[%s162_s15 + $0x2] sm:$0x3]  ;;  %v951_v2 = vld [vmem:[%s162_s15 + $0x4] sm:$0x3]  ;;  %v312_v4 = vrot.slane %v943_v0, 7  ;;  %vm196_vm1 = vcmask 122880  }
  0x3e   : > { %v955_v3 = vld [vmem:[%s162_s15 + $0x6] sm:$0x3]  ;;  %v313_v5 = vrot.slane %v947_v1, 7  ;;  %v314_v6 = vrot.slane %v951_v2, 7  ;;  %v799_v8 = vmov 0.0   ;;  %vm194_vm2 = vcmask 910336  }
  0x3f   : > { %v315_v7 = vrot.slane %v955_v3, 7  ;;  %199 = vst.msk [vmem:[#allocation4] sm:$0x3] %vm198_vm0, %v799_v8  ;;  %s800_s21 = smov 127   ;;  %vm297_vm3 = vcmask 1041536   ;;  %vm337_vm4 = vcmask 123905  }
  0x40   : > { %197 = vst.msk [vmem:[#allocation3] sm:$0x1] %vm196_vm1, %v799_v8  ;;  %v801_v45 = vmov 1966171168   ;;  %s802_s5 = smov 112   ;;  %v350_v57 = vshrl.u32 %v228_v44, 7 }
  0x41   : > { %210 = vrot.lane.b32.xlu1 %v947_v1, %s797_s30  ;;  %278 = vrot.lane.b32.xlu0 %v947_v1, %s798_s4  ;;  %195 = vst.msk [vmem:[#allocation2] sm:$0x3] %vm194_vm2, %v799_v8  ;;  %v347_v46 = vunpack.c.l.s4 %v801_v45  ;;  %v229_v8 = vand.u32 127, %v228_v44  ;;  %s187_s6 = scalar_lea.vmem [#allocation9], %s935_s7  ;;  %s562_s18 = sshll.u32 %s784_s12, 7 }
  0x42   : > { %s438_s16 = sshll.u32 %s187_s6, 4  ;;  %s180_s19 = scalar_lea.vmem [#allocation8], %s935_s7  ;;  %s1009_s16 = int_to_ptr.vmem [resolvable:$true] %s438_s16 }
  0x43   : > { %v348_v56 = vunpack.c.0.s8 %v347_v46  ;;  %s425_s20 = sshll.u32 %s180_s19, 4  ;;  %s1016_s29 = scalar_lea.hbm %s1094_s2, %s562_s18  ;;  %s1023_s20 = int_to_ptr.vmem [resolvable:$true] %s425_s20 }
  0x44   : > { %s412_s12 = scalar_lea.sflag [#allocation10], %s932_s3  ;;  %s678_s7 = scalar_lea.vmem %s1009_s16, 128 }
  0x45   : > { %212 = vrot.lane.b32.xlu1 %v951_v2, %s797_s30  ;;  %280 = vrot.lane.b32.xlu0 %v951_v2, %s798_s4  ;;  %v351_v63 = vsub.s32 %v348_v56, %v350_v57  ;;  %p679_p8 = scmp.ne.s32.totalorder %s1009_s16, %s678_s7  ;;  %p1104_p9 = scmp.ne.s32.totalorder %s1098_s22, 0 }
  0x47   : > { %p680_p11 = pnand %p679_p8, %p1104_p9 }
  0x49   : > { %214 = vrot.lane.b32.xlu1 %v955_v3, %s797_s30  ;;  %282 = vrot.lane.b32.xlu0 %v955_v3, %s798_s4  ;;  %p681_p0 = pneg %p680_p11 }
  0x4d   : > { %316 = vrot.lane.b32.xlu0 %v312_v4, %s798_s4  ;;  %318 = vrot.lane.b32.xlu1 %v313_v5, %s798_s4  ;;  %v332_v5 = vld [vmem:[#allocation3] sm:$0x1] }
  0x51   : > { %320 = vrot.lane.b32.xlu0 %v314_v6, %s798_s4  ;;  %322 = vrot.lane.b32.xlu1 %v315_v7, %s798_s4 }
  0xaf   : > { %v209_v9 = vpop.permute.xlu1 %208  ;;  %v277_v10 = vpop.permute.xlu0 %276 }
  0xb0   : > { %v220_v11 = vsub.f32 %v943_v0, %v209_v9  ;;  %v288_v15 = vsub.f32 %v943_v0, %v277_v10  ;;  %v234_v9 = vand.u32 15, %v229_v8 }
  0xb2   : > { %v224_v12 = vmul.f32 %v220_v11, %v220_v11  ;;  %v293_v22 = vmul.f32 %v288_v15, %v288_v15  ;;  %vm988_vm5 = vcmp.ne.s32.totalorder %v234_v9, 15 }
  0xb3   : > { %v211_v13 = vpop.permute.xlu1 %210  ;;  %v279_v14 = vpop.permute.xlu0 %278 }
  0xb4   : > { %v221_v16 = vsub.f32 %v947_v1, %v211_v13  ;;  %v289_v17 = vsub.f32 %v947_v1, %v279_v14  ;;  %249 = vrot.lane.b32.xlu0 %v224_v12, %s800_s21  ;;  %v298_v30 = vsel %vm297_vm3, %v293_v22, 0.0 }
  0xb6   : > { %v225_v18 = vmul.f32 %v221_v16, %v221_v16  ;;  %v294_v19 = vmul.f32 %v289_v17, %v289_v17 }
  0xb7   : > { %v213_v20 = vpop.permute.xlu1 %212  ;;  %v281_v21 = vpop.permute.xlu0 %280 }
  0xb8   : > { %v222_v23 = vsub.f32 %v951_v2, %v213_v20  ;;  %v290_v24 = vsub.f32 %v951_v2, %v281_v21  ;;  %251 = vrot.lane.b32.xlu1 %v225_v18, %s800_s21  ;;  %v299_v25 = vsel %vm297_vm3, %v294_v19, 0.0 }
  0xb9   : > { %v300_v34 = vadd.f32 %v299_v25, %v298_v30  ;;  %v265_v25 = vld [vmem:[#allocation4] sm:$0x3] }
  0xba   : > { %v226_v26 = vmul.f32 %v222_v23, %v222_v23  ;;  %v295_v27 = vmul.f32 %v290_v24, %v290_v24  ;;  %v292_v24 = vld [vmem:[#allocation2] sm:$0x3] }
  0xbb   : > { %v215_v28 = vpop.permute.xlu1 %214  ;;  %v283_v29 = vpop.permute.xlu0 %282 }
  0xbc   : > { %v301_v31 = vsel %vm297_vm3, %v295_v27, 0.0  ;;  %v223_v32 = vsub.f32 %v955_v3, %v215_v28  ;;  %v291_v33 = vsub.f32 %v955_v3, %v283_v29  ;;  %253 = vrot.lane.b32.xlu0 %v226_v26, %s800_s21 }
  0xbd   : > { %v302_v37 = vadd.f32 %v301_v31, %v300_v34 }
  0xbe   : > { %v227_v35 = vmul.f32 %v223_v32, %v223_v32  ;;  %v296_v36 = vmul.f32 %v291_v33, %v291_v33 }
  0xbf   : > { %v317_v38 = vpop.permute.xlu0 %316  ;;  %v319_v39 = vpop.permute.xlu1 %318 }
  0xc0   : > { %v303_v40 = vsel %vm297_vm3, %v296_v36, 0.0  ;;  %255 = vrot.lane.b32.xlu1 %v227_v35, %s800_s21  ;;  %v328_v41 = vsub.f32 %v943_v0, %v317_v38  ;;  %v329_v42 = vsub.f32 %v947_v1, %v319_v39  ;;  %s1021_s21 = scalar_lea.hbm %s1093_s1, %s562_s18 }
  0xc1   : > { %v304_v43 = vadd.f32 %v303_v40, %v302_v37 }
  0xc2   : > { %v333_v47 = vmul.f32 %v328_v41, %v328_v41  ;;  %v334_v48 = vmul.f32 %v329_v42, %v329_v42 }
  0xc3   : > { %306 = vrot.lane.b32.xlu0 %v304_v43, %s802_s5  ;;  %v321_v49 = vpop.permute.xlu0 %320  ;;  %v323_v50 = vpop.permute.xlu1 %322  ;;  %s803_s5 = smov [#allocation9]  }
  0xc4   : > { %v338_v51 = vsel %vm337_vm4, %v333_v47, 0.0  ;;  %v339_v52 = vsel %vm337_vm4, %v334_v48, 0.0  ;;  %v330_v53 = vsub.f32 %v951_v2, %v321_v49  ;;  %v331_v54 = vsub.f32 %v955_v3, %v323_v50 }
  0xc5   : > { %v340_v55 = vadd.f32 %v339_v52, %v338_v51 }
  0xc6   : > { %v335_v58 = vmul.f32 %v330_v53, %v330_v53  ;;  %v336_v59 = vmul.f32 %v331_v54, %v331_v54 }
  0xc8   : > { %v341_v60 = vsel %vm337_vm4, %v335_v58, 0.0  ;;  %v343_v61 = vsel %vm337_vm4, %v336_v59, 0.0 }
  0xc9   : > { %v342_v62 = vadd.f32 %v341_v60, %v340_v55 }
  0xcb   : > { %v344_v0 = vadd.f32 %v343_v61, %v342_v62 }
  0xcd   : > { %v352_v1 = vrot.slane %v344_v0, %v351_v63 }
  0xcf   : > { %v353_v4 = vcombine.high %v352_v1, %v352_v1 }
  0xd1   : > { %v360_v6 = vrot.slane %v353_v4, %v351_v63 }
  0xd3   : > { %v362_v7 = vadd.f32 %v360_v6, %v332_v5 }
  0xd5   : > { %364 = vst.msk [vmem:[#allocation3] sm:$0x1] %vm196_vm1, %v362_v7 }
  0xdc   : > { %v379_v2 = vld [vmem:[#allocation3] sm:$0x1] }
  0xdd   : > { %v380_v3 = vsel %vm196_vm1, %v379_v2, 0.0 }
  0xe2   : > { %381 = vadd.xlane.f32.xlu0 %v380_v3 }
 0x126   : > { %v250_v11 = vpop.permute.xlu0 %249 }
 0x127   : > { %v261_v14 = vsel %vm988_vm5, %v250_v11, 0.0 }
 0x128   : > { %v267_v18 = vsel %vm198_vm0, %v261_v14, 0.0 }
 0x12a   : > { %v252_v12 = vpop.permute.xlu1 %251 }
 0x12b   : > { %v262_v13 = vsel %vm988_vm5, %v252_v12, 0.0 }
 0x12c   : > { %v268_v15 = vsel %vm198_vm0, %v262_v13, 0.0 }
 0x12d   : > { %v269_v20 = vadd.f32 %v268_v15, %v267_v18 }
 0x12e   : > { %v254_v16 = vpop.permute.xlu0 %253 }
 0x12f   : > { %v263_v17 = vsel %vm988_vm5, %v254_v16, 0.0 }
 0x130   : > { %v270_v19 = vsel %vm198_vm0, %v263_v17, 0.0 }
 0x131   : > { %v271_v22 = vadd.f32 %v270_v19, %v269_v20 }
 0x132   : > { %v256_v21 = vpop.permute.xlu1 %255 }
 0x133   : > { %v264_v23 = vsel %vm988_vm5, %v256_v21, 0.0 }
 0x134   : > { %v272_v26 = vsel %vm198_vm0, %v264_v23, 0.0 }
 0x135   : > { %v273_v27 = vadd.f32 %v272_v26, %v271_v22  ;;  %v307_v28 = vpop.permute.xlu0 %306 }
 0x136   : > { %v309_v29 = vadd.f32 %v307_v28, %v292_v24 }
 0x137   : > { %v274_v30 = vadd.f32 %v273_v27, %v265_v25 }
 0x138   : > { %311 = vst.msk [vmem:[#allocation2] sm:$0x3] %vm194_vm2, %v309_v29 }
 0x139   : > { %275 = vst.msk [vmem:[#allocation4] sm:$0x3] %vm198_vm0, %v274_v30 }
 0x13f   : > { %v368_v31 = vld [vmem:[#allocation2] sm:$0x3] }
 0x140   : > { %v369_v32 = vsel %vm194_vm2, %v368_v31, 0.0  ;;  %v391_v33 = vld [vmem:[#allocation4] sm:$0x3] }
 0x141   : > { %370 = vadd.xlane.f32.xlu1 %v369_v32  ;;  %v392_v34 = vsel %vm198_vm0, %v391_v33, 0.0 }
 0x142   : > { %393 = vadd.xlane.f32.xlu0 %v392_v34 }
 0x16f   : > { %v382_v35 = vpop.xlane.xlu0 %381 }
 0x170   : > { %v383_v36 = vrot.slane %v382_v35, 4 }
 0x172   : > { %v384_v37 = vadd.f32 %v383_v36, %v382_v35 }
 0x174   : > { %v385_v38 = vrot.slane %v384_v37, 2 }
 0x176   : > { %v386_v45 = vadd.f32 %v385_v38, %v384_v37 }
 0x178   : > { %v387_v50 = vrot.slane %v386_v45, 1 }
 0x17a   : > { %v388_v54 = vadd.f32 %v387_v50, %v386_v45 }
 0x1ce   : > { %v371_v39 = vpop.xlane.xlu1 %370 }
 0x1cf   : > { %v372_v40 = vrot.slane %v371_v39, 4  ;;  %v394_v41 = vpop.xlane.xlu0 %393 }
 0x1d0   : > { %v395_v42 = vrot.slane %v394_v41, 4 }
 0x1d1   : > { %v373_v43 = vadd.f32 %v372_v40, %v371_v39 }
 0x1d2   : > { %v396_v44 = vadd.f32 %v395_v42, %v394_v41 }
 0x1d3   : > { %v374_v46 = vrot.slane %v373_v43, 2 }
 0x1d4   : > { %v397_v47 = vrot.slane %v396_v44, 2 }
 0x1d5   : > { %v375_v48 = vadd.f32 %v374_v46, %v373_v43 }
 0x1d6   : > { %v398_v49 = vadd.f32 %v397_v47, %v396_v44 }
 0x1d7   : > { %v376_v51 = vrot.slane %v375_v48, 1 }
 0x1d8   : > { %v399_v52 = vrot.slane %v398_v49, 1 }
 0x1d9   : > { %v377_v53 = vadd.f32 %v376_v51, %v375_v48 }
 0x1da   : > { %v400_v55 = vadd.f32 %v399_v52, %v398_v49 }
 0x1db   : > { %567 = vpush %v377_v53 }
 0x1dc   : > { %569 = vpush %v388_v54 }
 0x1dd   : > { %571 = vpush %v400_v55 }
 0x20c   : > { %s568_s25 = spop %567 }
 0x20d   : > { %s570_s26 = spop %569 }
 0x20e   : > { %s390_s8 = sadd.f32 %s570_s26, %s568_s25  ;;  %s572_s15 = spop %571 }
 0x20f   : > { %v404_v56 = vstv %s572_s15  ;;  %s682_s25 = sshll.u32 %s803_s5, 4  ;;  %s683_s25 = int_to_ptr.vmem [resolvable:$false] %s682_s25 }
 0x210   : > { %v402_v57 = vstv %s390_s8  ;;  %405 = vst [vmem:[%s187_s6] sm:$0xff] %v404_v56  ;;  %s684_s26 = scalar_lea.vmem %s683_s25, 256  ;;  %p685_p6 = scmp.lt.s32.totalorder %s1009_s16, %s683_s25 }
 0x211   : > { %403 = vst [vmem:[%s180_s19] sm:$0xff] %v402_v57  ;;  %p686_p13 = scmp.lt.s32.totalorder %s684_s26, %s678_s7 }
 0x213   : > { %p687_p2 = por %p686_p13, %p685_p6 }
 0x215   : > { %p688_p5 = pnand %p687_p2, %p681_p0 }
 0x217   : > { %691 = shalt.err (!%p688_p5)
}
 0x218   : > { %s692_s6 = scalar_lea.hbm %s1016_s29, 128  ;;  %s696_s27 = scalar_lea.hbm %s1094_s2, 256 }
 0x219   : > { %p693_p4 = scmp.ne.s32.totalorder %s1016_s29, %s692_s6  ;;  %p697_p12 = scmp.lt.u32.totalorder %s1016_s29, %s1094_s2 }
 0x21a   : > { %p698_p1 = scmp.lt.u32.totalorder %s696_s27, %s692_s6  ;;  %p700_p8 = scmp.lt.u32.totalorder %s692_s6, %s1016_s29 }
 0x21b   : > { %p694_p7 = pnand %p693_p4, %p1104_p9 }
 0x21c   : > { %p699_p3 = por %p698_p1, %p697_p12 }
 0x21d   : > { %p695_p10 = pneg %p694_p7 }
 0x21e   : > { %p701_p11 = por %p700_p8, %p699_p3 }
 0x220   : > { %p702_p0 = pnand %p701_p11, %p695_p10 }
 0x222   : > { %705 = shalt.err (!%p702_p0)
}
 0x223   : > { %576 = dma.vmem_to_hbm [thread:$0]  (%p1104_p9), %s1009_s16, 128, %s1016_s29, %s412_s12  }
 0x224   : > { %s407_s15 = scalar_lea.sflag [#allocation7], %s932_s3  ;;  %s706_s30 = scalar_lea.vmem %s1023_s20, 128 }
 0x225   : > { %p707_p6 = scmp.ne.s32.totalorder %s1023_s20, %s706_s30  ;;  %s804_s4 = smov [#allocation8]  }
 0x226   : > { %s710_s7 = sshll.u32 %s804_s4, 4  ;;  %s711_s7 = int_to_ptr.vmem [resolvable:$false] %s710_s7 }
 0x227   : > { %p708_p13 = pnand %p707_p6, %p1104_p9  ;;  %s712_s5 = scalar_lea.vmem %s711_s7, 256 }
 0x228   : > { %p713_p5 = scmp.lt.s32.totalorder %s1023_s20, %s711_s7  ;;  %p714_p4 = scmp.lt.s32.totalorder %s712_s5, %s706_s30 }
 0x229   : > { %p709_p2 = pneg %p708_p13 }
 0x22a   : > { %p715_p7 = por %p714_p4, %p713_p5 }
 0x22c   : > { %p716_p10 = pnand %p715_p7, %p709_p2 }
 0x22e   : > { %719 = shalt.err (!%p716_p10)
}
 0x22f   : > { %s720_s3 = scalar_lea.hbm %s1021_s21, 128  ;;  %s724_s12 = scalar_lea.hbm %s1093_s1, 256 }
 0x230   : > { %p721_p12 = scmp.ne.s32.totalorder %s1021_s21, %s720_s3  ;;  %p725_p8 = scmp.lt.u32.totalorder %s1021_s21, %s1093_s1 }
 0x231   : > { %p726_p11 = scmp.lt.u32.totalorder %s724_s12, %s720_s3  ;;  %p728_p6 = scmp.lt.u32.totalorder %s720_s3, %s1021_s21 }
 0x232   : > { %p722_p1 = pnand %p721_p12, %p1104_p9 }
 0x233   : > { %p727_p0 = por %p726_p11, %p725_p8 }
 0x234   : > { %p723_p3 = pneg %p722_p1 }
 0x235   : > { %p729_p13 = por %p728_p6, %p727_p0 }
 0x237   : > { %p730_p2 = pnand %p729_p13, %p723_p3 }
 0x239   : > { %733 = shalt.err (!%p730_p2)
}
 0x23a   : > { %575 = dma.vmem_to_hbm [thread:$0]  (%p1104_p9), %s1023_s20, 128, %s1021_s21, %s407_s15  }
 0x23b PF: > { %s450_s6 = sand.u32 1, %s772_s9   ;;  %p1105_p5 = scmp.ne.s32.totalorder %s1099_s24, 0 }
 0x23c   : > { %p1106_p4 = scmp.ge.s32.totalorder %s792_s14, 2  ;;  %s451_s18 = scalar_lea.sflag [#allocation7], %s450_s6 }
 0x23e   : > { %p584_p7 = pnand %p1106_p4, %p1105_p5 }
 0x240   : > { %763 = dma.done.wait (!%p584_p7), %s451_s18, 128  }
 0x241   : > { %765 = vsyncadd (!%p584_p7), %s451_s18, 4294967168  ;;  %s460_s19 = scalar_lea.sflag [#allocation10], %s450_s6 }
 0x242   : > { %767 = dma.done.wait (!%p584_p7), %s460_s19, 128  }
 0x243   : > { %769 = vsyncadd (!%p584_p7), %s460_s19, 4294967168  ;;  %s22_s14 = sadd.s32 1, %s792_s14   ;;  %s1107_s9 = smov %s776_s10 }
 0x244   : > { %p19_p10 = scmp.ge.s32.totalorder %s22_s14, 4   ;;  %s1108_s10 = smov %s780_s11 }
 0x245   : > { %s1109_s11 = smov %s876_s23  ;;  %s1110_s12 = smov %s788_s13 }
 0x246   : > { %s1111_s13 = smov %s1113_s17  ;;  %21 = sbr.rel (!%p19_p10) target bundleno = 8 (0x8), region = 94 }
 0x24d   :  { %465 = vsyncpa [#allocation6], 1 }
 0x24e   :  { %467 = vsyncpa [#allocation6 + $0x1], 1 }
 0x24f   :  { %468 = vsyncpa [#allocation7], 1 }
 0x250   :  { %470 = vsyncpa [#allocation7 + $0x1], 1 }
 0x251   :  { %471 = vsyncpa [#allocation10], 1 }
 0x252   :  { %473 = vsyncpa [#allocation10 + $0x1], 1 }

</bundles_post_ra>
